<compile_context>
chip_gen: v7x
topology: tpu7x:2x2x1
jax: 0.10.0
libtpu: 0.0.40
codegen_flags: <defaults>
</compile_context>

<pallas_src>
import functools

import jax
import jax.numpy as jnp
from jax.experimental import pallas as pl
from jax.experimental.pallas import tpu as pltpu

IN_FEATURES = 32 * 32   # 1024
HIDDEN = 128
OUT_FEATURES = 10
OUT_PADDED = 128        # lane-dense output width


def _round_up(n, m):
    return ((n + m - 1) // m) * m


def fold_weights(w1_t, w2_t):
    """One-time weight prep (hoisted out of the forward path).

    w1_t: (1024, 128) f32, w2_t: (128, 10) f32  ->  (1024, 128) bf16,
    columns [10:128] zero (lane-dense output, sliced off by the wrapper).
    """
    wc = w1_t @ w2_t                                            # (1024, 10) f32
    wc_padded = jnp.zeros((IN_FEATURES, OUT_PADDED), jnp.float32)
    wc_padded = wc_padded.at[:, :OUT_FEATURES].set(wc)
    return wc_padded.astype(jnp.bfloat16)


def simple_linear_kernel(x_ref, wc_ref, o_ref):
    # x_ref : (tb, 1024)  f32   VMEM  (cast to bf16 here, hidden under the DMA)
    # wc_ref: (1024, 128) bf16  VMEM  (resident combined fc1@fc2 weight, zero-padded cols)
    # o_ref : (tb, 128)   f32   VMEM  (lane-dense; cols >= 10 are zero)
    x_bf = x_ref[...].astype(jnp.bfloat16)
    y = jnp.dot(x_bf, wc_ref[...], preferred_element_type=jnp.float32)
    o_ref[...] = y.astype(o_ref.dtype)


@functools.partial(jax.jit, static_argnames=("block_b",))
def simple_linear(x, wc_bf, *, block_b=1024):
    """x: (B, 32, 32) f32; wc_bf: (1024, 128) bf16 (from fold_weights) -> (B, 10) f32."""
    B = x.shape[0]
    x_flat = x.reshape(B, IN_FEATURES)                  # Flatten(1)

    # Batch tile: multiple of 8 (f32 sublane), capped at block_b, and capped at
    # ~B/2 so the "parallel" grid axis has >= 2 steps (both v7x TensorCores busy).
    half = _round_up(pl.cdiv(B, 2), 8)
    tb = max(8, min(block_b, half))
    grid = (pl.cdiv(B, tb),)                            # partial last block OK (masked stores)

    out = pl.pallas_call(
        simple_linear_kernel,
        out_shape=jax.ShapeDtypeStruct((B, OUT_PADDED), jnp.float32),
        grid_spec=pl.GridSpec(
            grid=grid,
            in_specs=[
                pl.BlockSpec((tb, IN_FEATURES), lambda i: (i, 0)),       # x tile
                pl.BlockSpec((IN_FEATURES, OUT_PADDED), lambda i: (0, 0)),  # Wc resident
            ],
            out_specs=pl.BlockSpec((tb, OUT_PADDED), lambda i: (i, 0)),
        ),
        compiler_params=pltpu.CompilerParams(
            dimension_semantics=("parallel",),
        ),
    )(x_flat, wc_bf)

    return out[:, :OUT_FEATURES]


def init_params(key):
    # Mimic torch.nn.Linear default init (uniform +/- 1/sqrt(fan_in)), stored transposed.
    k1, k2 = jax.random.split(key)
    bound1 = 1.0 / IN_FEATURES ** 0.5
    bound2 = 1.0 / HIDDEN ** 0.5
    w1 = jax.random.uniform(k1, (HIDDEN, IN_FEATURES), jnp.float32, -bound1, bound1)
    w2 = jax.random.uniform(k2, (OUT_FEATURES, HIDDEN), jnp.float32, -bound2, bound2)
    return w1.T, w2.T  # (1024, 128), (128, 10)


if __name__ == "__main__":
    # TODO(synk): ModelHook is a pure instrumentation hook (no compute); not translated.
    key = jax.random.PRNGKey(0)
    kx, kp = jax.random.split(key)

    B = 8
    x = jax.random.normal(kx, (B, 32, 32), jnp.float32)
    w1_t, w2_t = init_params(kp)

    # One-time weight prep (outside the per-call forward path).
    wc_bf = jax.block_until_ready(fold_weights(w1_t, w2_t))

    out = simple_linear(x, wc_bf)
    out = jax.block_until_ready(out)
    assert out.shape == (B, OUT_FEATURES)

    # Strict reference along the same folded bf16-weight / f32-accumulate path.
    x_flat = x.reshape(B, IN_FEATURES)
    ref_bf = jnp.dot(x_flat.astype(jnp.bfloat16), wc_bf,
                     preferred_element_type=jnp.float32)[:, :OUT_FEATURES]
    assert jnp.allclose(out, ref_bf, atol=2e-3, rtol=2e-3), "mismatch vs folded bf16 reference"

    # Full-f32 two-stage reference (loose check, bounds bf16 quantization error).
    ref_f32 = x_flat @ w1_t @ w2_t
    assert jnp.allclose(out, ref_f32, atol=5e-2, rtol=5e-2), "mismatch vs f32 reference"

    print("KERNEL_OK")
</pallas_src>

<mosaic_0001>
module attributes {stable_mosaic.version = 11 : i64} {
  func.func @simple_linear_kernel(%arg0: i32, %arg1: memref<8x1024xf32, #tpu.memory_space<vmem>>, %arg2: memref<1024x128xbf16, #tpu.memory_space<vmem>>, %arg3: memref<8x128xf32, #tpu.memory_space<vmem>>) attributes {dimension_semantics = [#tpu.dimension_semantics<parallel>], iteration_bounds = array<i64: 1>, scalar_prefetch = 0 : i64, scratch_operands = 0 : i64, tpu.core_type = #tpu.core_type<tc>, window_params = [{transform_indices = @transform_0, window_bounds = array<i64: 8, 1024>}, {pipeline_mode = #tpu.pipeline_mode<synchronous>, transform_indices = @transform_1, window_bounds = array<i64: 1024, 128>}, {transform_indices = @transform_2, window_bounds = array<i64: 8, 128>}]} {
    %c0 = arith.constant 0 : index
    %c0_0 = arith.constant 0 : index
    %0 = vector.load %arg1[%c0, %c0_0] : memref<8x1024xf32, #tpu.memory_space<vmem>>, vector<8x1024xf32>
    %1 = arith.truncf %0 : vector<8x1024xf32> to vector<8x1024xbf16>
    %c0_1 = arith.constant 0 : index
    %c0_2 = arith.constant 0 : index
    %2 = vector.load %arg2[%c0_1, %c0_2] : memref<1024x128xbf16, #tpu.memory_space<vmem>>, vector<1024x128xbf16>
    %cst = arith.constant dense<0.000000e+00> : vector<8x128xf32>
    %3 = tpu.matmul %1, %2, %cst {dimension_numbers = #tpu.dot_dimension_numbers<[1], [0], [0], [1], [0, 0, 1, 1], [], []>} : vector<8x1024xbf16>, vector<1024x128xbf16>, vector<8x128xf32> -> vector<8x128xf32>
    %c0_3 = arith.constant 0 : index
    %c0_4 = arith.constant 0 : index
    %4 = vector.load %arg3[%c0_3, %c0_4] : memref<8x128xf32, #tpu.memory_space<vmem>>, vector<8x128xf32>
    tpu.vector_store %arg3[%c0_3, %c0_4], %3 {strides = array<i32>} : memref<8x128xf32, #tpu.memory_space<vmem>>, vector<8x128xf32>,
    return
  }
  func.func @transform_0(%arg0: i32) -> (i32, i32) {
    %c0_i32 = arith.constant 0 : i32
    %c0_i32_0 = arith.constant 0 : i32
    return %arg0, %c0_i32 : i32, i32
  }
  func.func @transform_1(%arg0: i32) -> (i32, i32) {
    %c0_i32 = arith.constant 0 : i32
    %c0_i32_0 = arith.constant 0 : i32
    %c0_i32_1 = arith.constant 0 : i32
    return %c0_i32, %c0_i32_0 : i32, i32
  }
  func.func @transform_2(%arg0: i32) -> (i32, i32) {
    %c0_i32 = arith.constant 0 : i32
    %c0_i32_0 = arith.constant 0 : i32
    return %arg0, %c0_i32 : i32, i32
  }
}

</mosaic_0001>

<bundles_post_ra>
// kernel: simple_linear.1
= control target key start
LH: loop header
LB: loop body
LE: loop exit
PB: predicated region body
PF: predicated region fallthrough
CT: control target
= control target key end

     0   :  { %7 = vsyncpa [#allocation3], 0  ;;  %s1066_s0 = inlined_call_operand.vmem [shape: f32[8,1024], index: 0, kind: input, shape index: {}]   ;;  %s1067_s1 = inlined_call_operand.hbm [shape: bf16[1024,128], index: 1, kind: input, shape index: {}]   ;;  %s1068_s2 = inlined_call_operand.hbm [shape: f32[8,128], index: 2, kind: output, shape index: {}]  }
   0x1   :  { %8 = vsyncpa [#allocation4], 0  ;;  %s999_s9 = smov [#allocation2]   ;;  %s951_s13 = scalar_lea.hbm %s1067_s1, 8192 }
   0x2   :  { %s16_s10 = sshll.u32 %s999_s9, 4  ;;  %p952_p0 = scmp.ne.s32.totalorder %s1067_s1, %s951_s13  ;;  %s17_s10 = int_to_ptr.vmem [resolvable:$true] %s16_s10 }
   0x3   :  { %p955_p1 = scmp.lt.u32.totalorder %s951_s13, %s1067_s1 }
   0x5   :  { %p957_p2 = pnand %p955_p1, %p952_p0 }
   0x7   :  { %960 = shalt.err (!%p957_p2)
}
   0x8   :  { %s961_s18 = scalar_lea.vmem %s17_s10, 8192  ;;  %p966_p4 = scmp.lt.s32.totalorder %s17_s10, %s17_s10 }
   0x9   :  { %p962_p3 = scmp.ne.s32.totalorder %s17_s10, %s961_s18  ;;  %p967_p5 = scmp.lt.s32.totalorder %s961_s18, %s961_s18 }
   0xb   :  { %p968_p6 = por %p967_p5, %p966_p4 }
   0xd   :  { %p969_p7 = pnand %p968_p6, %p962_p3 }
   0xf   :  { %972 = shalt.err (!%p969_p7)
}
  0x10   :  { %s1000_s19 = smov 64   ;;  %s1001_s20 = smov 4  }
  0x11   :  { %22 = dma.hbm_to_vmem [thread:$0]  %s1067_s1, 8192, %s17_s10, [#allocation3], %s1000_s19, %s1000_s19, %s1001_s20  }
  0x12   :  { %995 = dma.done.wait [#allocation3], 8192  }
  0x13   :  { %996 = vsyncadd [#allocation3], 4294959104  ;;  %v887_v0 = vld [vmem:[#allocation2 + $0x40] sm:$0xff]   ;;  %v891_v4 = vld [vmem:[#allocation2 + $0x48] sm:$0xff]  }
  0x14   :  { %v888_v1 = vld [vmem:[#allocation2 + $0xc0] sm:$0xff]   ;;  %795 = vmatprep.subr.bf16.mxu0 %v887_v0  ;;  %v892_v5 = vld [vmem:[#allocation2 + $0xc8] sm:$0xff]   ;;  %v895_v8 = vld [vmem:[#allocation2 + $0x50] sm:$0xff]  }
  0x15   :  { %v889_v2 = vld [vmem:[#allocation2] sm:$0xff]   ;;  %817 = vmatprep.subr.bf16.mxu1 %v888_v1  ;;  %v893_v6 = vld [vmem:[#allocation2 + $0x8] sm:$0xff]   ;;  %v896_v9 = vld [vmem:[#allocation2 + $0xd0] sm:$0xff]  }
  0x16   :  { %v890_v3 = vld [vmem:[#allocation2 + $0x80] sm:$0xff]   ;;  %796 = vmatpush3.bf16.msra.mxu0 %v889_v2  ;;  %v894_v7 = vld [vmem:[#allocation2 + $0x88] sm:$0xff]   ;;  %v897_v10 = vld [vmem:[#allocation2 + $0x10] sm:$0xff]  }
  0x17   :  { %818 = vmatpush3.bf16.msra.mxu1 %v890_v3  ;;  %797 = vmatprep.subr.bf16.mxu0 %v891_v4  ;;  %v898_v11 = vld [vmem:[#allocation2 + $0x90] sm:$0xff]   ;;  %v899_v12 = vld [vmem:[#allocation2 + $0x58] sm:$0xff]   ;;  %v903_v16 = vld [vmem:[#allocation2 + $0x60] sm:$0xff]  }
  0x18   :  { %819 = vmatprep.subr.bf16.mxu1 %v892_v5  ;;  %v900_v13 = vld [vmem:[#allocation2 + $0xd8] sm:$0xff]   ;;  %v904_v17 = vld [vmem:[#allocation2 + $0xe0] sm:$0xff]   ;;  %v907_v20 = vld [vmem:[#allocation2 + $0x68] sm:$0xff]  }
  0x19   :  { %v901_v14 = vld [vmem:[#allocation2 + $0x18] sm:$0xff]   ;;  %v905_v18 = vld [vmem:[#allocation2 + $0x20] sm:$0xff]   ;;  %v908_v21 = vld [vmem:[#allocation2 + $0xe8] sm:$0xff]  }
  0x1a   :  { %798 = vmatpush3.bf16.msra.mxu0 %v893_v6  ;;  %v902_v15 = vld [vmem:[#allocation2 + $0x98] sm:$0xff]   ;;  %v906_v19 = vld [vmem:[#allocation2 + $0xa0] sm:$0xff]   ;;  %v909_v22 = vld [vmem:[#allocation2 + $0x28] sm:$0xff]  }
  0x1b   :  { %820 = vmatpush3.bf16.msra.mxu1 %v894_v7  ;;  %799 = vmatprep.subr.bf16.mxu0 %v895_v8  ;;  %v910_v23 = vld [vmem:[#allocation2 + $0xa8] sm:$0xff]   ;;  %v911_v24 = vld [vmem:[#allocation2 + $0x70] sm:$0xff]   ;;  %v915_v28 = vld [vmem:[#allocation2 + $0x78] sm:$0xff]  }
  0x1c   :  { %821 = vmatprep.subr.bf16.mxu1 %v896_v9  ;;  %v912_v25 = vld [vmem:[#allocation2 + $0xf0] sm:$0xff]   ;;  %v916_v29 = vld [vmem:[#allocation2 + $0xf8] sm:$0xff]   ;;  %v28_v32 = vld [vmem:[%s1066_s0 + $0x8] sm:$0xff] }
  0x1d   :  { %v913_v26 = vld [vmem:[#allocation2 + $0x30] sm:$0xff]   ;;  %v917_v30 = vld [vmem:[#allocation2 + $0x38] sm:$0xff]   ;;  %v27_v34 = vld [vmem:[%s1066_s0] sm:$0xff]  ;;  %v36_v35 = vpack.c.bf16 %v28_v32, %v28_v32 }
  0x1e   :  { %800 = vmatpush3.bf16.msra.mxu0 %v897_v10  ;;  %v914_v27 = vld [vmem:[#allocation2 + $0xb0] sm:$0xff]   ;;  %v918_v31 = vld [vmem:[#allocation2 + $0xb8] sm:$0xff]   ;;  %v35_v37 = vpack.c.bf16 %v27_v34, %v27_v34  ;;  %v919_v40 = vld [vmem:[#allocation2 + $0x140] sm:$0xff]  }
  0x1f   :  { %822 = vmatpush3.bf16.msra.mxu1 %v898_v11  ;;  %801 = vmatprep.subr.bf16.mxu0 %v899_v12  ;;  %v30_v33 = vld [vmem:[%s1066_s0 + $0x18] sm:$0xff]  ;;  %v29_v38 = vld [vmem:[%s1066_s0 + $0x10] sm:$0xff]  ;;  %v920_v41 = vld [vmem:[#allocation2 + $0x1c0] sm:$0xff]  }
  0x20   :  { %823 = vmatprep.subr.bf16.mxu1 %v900_v13  ;;  %v38_v36 = vpack.c.bf16 %v30_v33, %v30_v33  ;;  %v37_v39 = vpack.c.bf16 %v29_v38, %v29_v38  ;;  %587 = vmatprep.mubr.bf16.mxu0 %v36_v35  ;;  %v921_v42 = vld [vmem:[#allocation2 + $0x100] sm:$0xff]   ;;  %v923_v44 = vld [vmem:[#allocation2 + $0x148] sm:$0xff]   ;;  %v927_v48 = vld [vmem:[#allocation2 + $0x150] sm:$0xff]  }
  0x21   :  { %v922_v43 = vld [vmem:[#allocation2 + $0x180] sm:$0xff]   ;;  %v924_v45 = vld [vmem:[#allocation2 + $0x1c8] sm:$0xff]   ;;  %v928_v49 = vld [vmem:[#allocation2 + $0x1d0] sm:$0xff]  }
  0x22   :  { %802 = vmatpush3.bf16.msra.mxu0 %v901_v14  ;;  %627 = vmatprep.mubr.bf16.mxu1 %v38_v36  ;;  %v925_v46 = vld [vmem:[#allocation2 + $0x108] sm:$0xff]   ;;  %v929_v50 = vld [vmem:[#allocation2 + $0x110] sm:$0xff]   ;;  %v931_v52 = vld [vmem:[#allocation2 + $0x158] sm:$0xff]  }
  0x23   :  { %824 = vmatpush3.bf16.msra.mxu1 %v902_v15  ;;  %803 = vmatprep.subr.bf16.mxu0 %v903_v16  ;;  %v926_v47 = vld [vmem:[#allocation2 + $0x188] sm:$0xff]   ;;  %v930_v51 = vld [vmem:[#allocation2 + $0x190] sm:$0xff]   ;;  %v932_v53 = vld [vmem:[#allocation2 + $0x1d8] sm:$0xff]  }
  0x24   :  { %825 = vmatprep.subr.bf16.mxu1 %v904_v17  ;;  %v933_v54 = vld [vmem:[#allocation2 + $0x118] sm:$0xff]   ;;  %v935_v56 = vld [vmem:[#allocation2 + $0x160] sm:$0xff]   ;;  %v939_v60 = vld [vmem:[#allocation2 + $0x168] sm:$0xff]  }
  0x25   :  { %v934_v55 = vld [vmem:[#allocation2 + $0x198] sm:$0xff]   ;;  %v936_v57 = vld [vmem:[#allocation2 + $0x1e0] sm:$0xff]   ;;  %v940_v61 = vld [vmem:[#allocation2 + $0x1e8] sm:$0xff]  }
  0x26   :  { %804 = vmatpush3.bf16.msra.mxu0 %v905_v18  ;;  %v937_v58 = vld [vmem:[#allocation2 + $0x120] sm:$0xff]   ;;  %v941_v62 = vld [vmem:[#allocation2 + $0x128] sm:$0xff]   ;;  %v943_v0 = vld [vmem:[#allocation2 + $0x170] sm:$0xff]  }
  0x27   :  { %826 = vmatpush3.bf16.msra.mxu1 %v906_v19  ;;  %805 = vmatprep.subr.bf16.mxu0 %v907_v20  ;;  %v938_v59 = vld [vmem:[#allocation2 + $0x1a0] sm:$0xff]   ;;  %v942_v63 = vld [vmem:[#allocation2 + $0x1a8] sm:$0xff]   ;;  %v944_v1 = vld [vmem:[#allocation2 + $0x1f0] sm:$0xff]  }
  0x28   :  { %827 = vmatprep.subr.bf16.mxu1 %v908_v21  ;;  %v945_v2 = vld [vmem:[#allocation2 + $0x130] sm:$0xff]   ;;  %v947_v4 = vld [vmem:[#allocation2 + $0x178] sm:$0xff]   ;;  %v32_v8 = vld [vmem:[%s1066_s0 + $0x28] sm:$0xff] }
  0x29   :  { %v946_v3 = vld [vmem:[#allocation2 + $0x1b0] sm:$0xff]   ;;  %v948_v5 = vld [vmem:[#allocation2 + $0x1f8] sm:$0xff]   ;;  %v40_v10 = vpack.c.bf16 %v32_v8, %v32_v8  ;;  %v31_v12 = vld [vmem:[%s1066_s0 + $0x20] sm:$0xff] }
  0x2a   :  { %806 = vmatpush3.bf16.msra.mxu0 %v909_v22  ;;  %v949_v6 = vld [vmem:[#allocation2 + $0x138] sm:$0xff]   ;;  %v33_v13 = vld [vmem:[%s1066_s0 + $0x30] sm:$0xff]  ;;  %v39_v14 = vpack.c.bf16 %v31_v12, %v31_v12 }
  0x2b   :  { %828 = vmatpush3.bf16.msra.mxu1 %v910_v23  ;;  %807 = vmatprep.subr.bf16.mxu0 %v911_v24  ;;  %v950_v7 = vld [vmem:[#allocation2 + $0x1b8] sm:$0xff]   ;;  %v41_v15 = vpack.c.bf16 %v33_v13, %v33_v13 }
  0x2c   :  { %829 = vmatprep.subr.bf16.mxu1 %v912_v25  ;;  %v34_v9 = vld [vmem:[%s1066_s0 + $0x38] sm:$0xff]  ;;  %s1002_s0 = smov [#allocation5]  }
  0x2d   :  { %v42_v11 = vpack.c.bf16 %v34_v9, %v34_v9  ;;  %s722_s10 = sshll.u32 %s1002_s0, 4  ;;  %s723_s10 = int_to_ptr.vmem [resolvable:$true] %s722_s10 }
  0x2e   :  { %808 = vmatpush3.bf16.msra.mxu0 %v913_v26  ;;  %s973_s11 = scalar_lea.vmem %s723_s10, 128  ;;  %p978_p9 = scmp.lt.s32.totalorder %s723_s10, %s723_s10 }
  0x2f   :  { %830 = vmatpush3.bf16.msra.mxu1 %v914_v27  ;;  %809 = vmatprep.subr.bf16.mxu0 %v915_v28  ;;  %p974_p8 = scmp.ne.s32.totalorder %s723_s10, %s973_s11  ;;  %p979_p10 = scmp.lt.s32.totalorder %s973_s11, %s973_s11 }
  0x30   :  { %831 = vmatprep.subr.bf16.mxu1 %v916_v29 }
  0x31   :  { %p980_p11 = por %p979_p10, %p978_p9 }
  0x32   :  { %810 = vmatpush3.bf16.msra.mxu0 %v917_v30 }
  0x33   :  { %832 = vmatpush3.bf16.msra.mxu1 %v918_v31  ;;  %839 = vmatprep.subr.bf16.mxu0 %v919_v40  ;;  %p981_p12 = pnand %p980_p11, %p974_p8 }
  0x34   :  { %861 = vmatprep.subr.bf16.mxu1 %v920_v41 }
  0x35   :  { %588 = vmatmul.mubr.bf16.vlgmr.msra.gmra.mrb[0].mxu0 %v35_v37 }
  0x36   :  { %628 = vmatmul.mubr.bf16.vlgmr.msra.gmra.mrb[0].mxu1 %v37_v39  ;;  %840 = vmatpush3.bf16.msra.mxu0 %v921_v42 }
  0x37   :  { %862 = vmatpush3.bf16.msra.mxu1 %v922_v43  ;;  %841 = vmatprep.subr.bf16.mxu0 %v923_v44 }
  0x38   :  { %863 = vmatprep.subr.bf16.mxu1 %v924_v45  ;;  %667 = vmatprep.mubr.bf16.mxu0 %v40_v10 }
  0x39   :  { %707 = vmatprep.mubr.bf16.mxu1 %v42_v11 }
  0x3a   :  { %842 = vmatpush3.bf16.msra.mxu0 %v925_v46 }
  0x3b   :  { %864 = vmatpush3.bf16.msra.mxu1 %v926_v47  ;;  %843 = vmatprep.subr.bf16.mxu0 %v927_v48 }
  0x3c   :  { %865 = vmatprep.subr.bf16.mxu1 %v928_v49 }
  0x3e   :  { %844 = vmatpush3.bf16.msra.mxu0 %v929_v50 }
  0x3f   :  { %866 = vmatpush3.bf16.msra.mxu1 %v930_v51  ;;  %845 = vmatprep.subr.bf16.mxu0 %v931_v52 }
  0x40   :  { %867 = vmatprep.subr.bf16.mxu1 %v932_v53 }
  0x42   :  { %846 = vmatpush3.bf16.msra.mxu0 %v933_v54 }
  0x43   :  { %868 = vmatpush3.bf16.msra.mxu1 %v934_v55  ;;  %847 = vmatprep.subr.bf16.mxu0 %v935_v56 }
  0x44   :  { %869 = vmatprep.subr.bf16.mxu1 %v936_v57 }
  0x46   :  { %848 = vmatpush3.bf16.msra.mxu0 %v937_v58 }
  0x47   :  { %870 = vmatpush3.bf16.msra.mxu1 %v938_v59  ;;  %849 = vmatprep.subr.bf16.mxu0 %v939_v60 }
  0x48   :  { %871 = vmatprep.subr.bf16.mxu1 %v940_v61 }
  0x4a   :  { %850 = vmatpush3.bf16.msra.mxu0 %v941_v62 }
  0x4b   :  { %872 = vmatpush3.bf16.msra.mxu1 %v942_v63  ;;  %851 = vmatprep.subr.bf16.mxu0 %v943_v0 }
  0x4c   :  { %873 = vmatprep.subr.bf16.mxu1 %v944_v1 }
  0x4e   :  { %852 = vmatpush3.bf16.msra.mxu0 %v945_v2 }
  0x4f   :  { %874 = vmatpush3.bf16.msra.mxu1 %v946_v3  ;;  %853 = vmatprep.subr.bf16.mxu0 %v947_v4 }
  0x50   :  { %875 = vmatprep.subr.bf16.mxu1 %v948_v5 }
  0x52   :  { %854 = vmatpush3.bf16.msra.mxu0 %v949_v6 }
  0x53   :  { %876 = vmatpush3.bf16.msra.mxu1 %v950_v7 }
  0x55   :  { %668 = vmatmul.mubr.bf16.vlgmr.msra.gmra.mrb[4].mxu0 %v39_v14 }
  0x56   :  { %708 = vmatmul.mubr.bf16.vlgmr.msra.gmra.mrb[4].mxu1 %v41_v15 }
 0x108   :  { %v811_v16 = vpop.f32.mrb[0].mxu0 }
 0x109   :  { %v833_v17 = vpop.f32.mrb[0].mxu1  ;;  %v812_v18 = vpop.f32.mrb[1].mxu0 }
 0x10a   :  { %v834_v19 = vpop.f32.mrb[1].mxu1  ;;  %v813_v20 = vadd.f32 %v812_v18, %v811_v16  ;;  %v814_v22 = vpop.f32.mrb[2].mxu0 }
 0x10b   :  { %v835_v21 = vadd.f32 %v834_v19, %v833_v17  ;;  %v836_v23 = vpop.f32.mrb[2].mxu1  ;;  %v815_v24 = vpop.f32.mrb[3].mxu0 }
 0x10c   :  { %v837_v25 = vpop.f32.mrb[3].mxu1 }
 0x10d   :  { %v630_v26 = vadd.f32 %v835_v21, %v813_v20 }
 0x128   :  { %v855_v27 = vpop.f32.mrb[4].mxu0 }
 0x129   :  { %v877_v28 = vpop.f32.mrb[4].mxu1  ;;  %v856_v29 = vpop.f32.mrb[5].mxu0 }
 0x12a   :  { %v857_v30 = vadd.f32 %v856_v29, %v855_v27  ;;  %v878_v31 = vpop.f32.mrb[5].mxu1  ;;  %v858_v32 = vpop.f32.mrb[6].mxu0 }
 0x12b   :  { %v879_v33 = vadd.f32 %v878_v31, %v877_v28  ;;  %v880_v34 = vpop.f32.mrb[6].mxu1  ;;  %v859_v35 = vpop.f32.mrb[7].mxu0 }
 0x12c   :  { %v670_v36 = vadd.f32 %v857_v30, %v630_v26  ;;  %v881_v37 = vpop.f32.mrb[7].mxu1 }
 0x12e   :  { %v710_v38 = vadd.f32 %v879_v33, %v670_v36 }
 0x130   :  { %715 = vst [vmem:[#allocation5] sm:$0xff] %v710_v38 }
 0x131   :  { %984 = shalt.err (!%p981_p12)
}
 0x132   :  { %s985_s14 = scalar_lea.hbm %s1068_s2, 128 }
 0x133   :  { %p986_p13 = scmp.ne.s32.totalorder %s1068_s2, %s985_s14  ;;  %p989_p0 = scmp.lt.u32.totalorder %s985_s14, %s1068_s2 }
 0x135   :  { %p991_p1 = pnand %p989_p0, %p986_p13 }
 0x137   :  { %994 = shalt.err (!%p991_p1)
}
 0x138   :  { %725 = dma.vmem_to_hbm [thread:$0]  %s723_s10, 128, %s1068_s2, [#allocation4]  }
 0x139   :  { %997 = dma.done.wait [#allocation4], 128  }
 0x13a   :  { %998 = vsyncadd [#allocation4], 4294967168 }
 0x13b   :  { %729 = vsyncpa [#allocation3], 1 }
 0x13c   :  { %730 = vsyncpa [#allocation4], 1 }

</bundles_post_ra>
